<compile_context>
chip_gen: v5e
topology: v5e:2x2
jax: 0.10.0
libtpu: 0.0.40
codegen_flags: <defaults>
</compile_context>

<pallas_src>
import functools

import jax
import jax.numpy as jnp
from jax.experimental import pallas as pl
from jax.experimental.pallas import tpu as pltpu


# ------------------------------ shared math ---------------------------------

def _latent_residual_bd(x_f32, w1, b1, w2, b2, mxu_dtype):
    """dx = tanh(x@W1 + b1)@W2 + b2 - x with batch on ROWS (shape (bb, D)).

    MXU operands cast to `mxu_dtype`, f32 accumulation; bias add and the
    residual correction stay in f32.
    """
    xm = x_f32.astype(mxu_dtype)
    h = jnp.tanh(
        jnp.dot(xm, w1.astype(mxu_dtype), preferred_element_type=jnp.float32)
        + b1.astype(jnp.float32))
    latent = (
        jnp.dot(h.astype(mxu_dtype), w2.astype(mxu_dtype),
                preferred_element_type=jnp.float32)
        + b2.astype(jnp.float32))
    return latent - x_f32


def _latent_residual_db(xt_f32, w1t, b1c, w2t, b2c, mxu_dtype):
    """Same math, lane-dense: batch on LANES (shape (D, bb))."""
    xm = xt_f32.astype(mxu_dtype)
    h = jnp.tanh(
        jnp.dot(w1t.astype(mxu_dtype), xm, preferred_element_type=jnp.float32)
        + b1c.astype(jnp.float32))
    latent = (
        jnp.dot(w2t.astype(mxu_dtype), h.astype(mxu_dtype),
                preferred_element_type=jnp.float32)
        + b2c.astype(jnp.float32))
    return latent - xt_f32


# -------------------------------- kernels ------------------------------------

def _dx_bd_kernel(x_ref, w1_ref, b1_ref, w2_ref, b2_ref, o_ref, *, mxu_dtype):
    # x block: (bb, D); weights whole-array VMEM-resident.
    x = x_ref[...].astype(jnp.float32)
    dx = _latent_residual_bd(x, w1_ref[...], b1_ref[...], w2_ref[...],
                             b2_ref[...], mxu_dtype)
    o_ref[...] = dx.astype(o_ref.dtype)


def _dx_db_kernel(xt_ref, w1t_ref, b1_ref, w2t_ref, b2_ref, o_ref, *, mxu_dtype):
    # x block: (D, bb) lane-dense (batch on lanes -> full-width stores).
    xt = xt_ref[...].astype(jnp.float32)
    dx = _latent_residual_db(xt, w1t_ref[...], b1_ref[...], w2t_ref[...],
                             b2_ref[...], mxu_dtype)
    o_ref[...] = dx.astype(o_ref.dtype)


def _rk4_db_kernel(xt_ref, w1t_ref, b1_ref, w2t_ref, b2_ref, o_ref,
                   *, dt, mxu_dtype):
    # Four derivative evaluations fused in one kernel invocation; weights and
    # the state tile never leave VMEM/vregs between stages.
    xt = xt_ref[...].astype(jnp.float32)
    w1t = w1t_ref[...]
    b1 = b1_ref[...]
    w2t = w2t_ref[...]
    b2 = b2_ref[...]
    f = lambda y: _latent_residual_db(y, w1t, b1, w2t, b2, mxu_dtype)
    k1 = f(xt)
    k2 = f(xt + (0.5 * dt) * k1)
    k3 = f(xt + (0.5 * dt) * k2)
    k4 = f(xt + dt * k3)
    o_ref[...] = (xt + (dt / 6.0) * (k1 + 2.0 * k2 + 2.0 * k3 + k4)).astype(o_ref.dtype)


# --------------------------- tiling / budgeting -------------------------------

def _round_up(n, m):
    return ((n + m - 1) // m) * m


def _num_tensorcores():
    """Best-effort megacore detection (2 TCs driven by one Pallas program)."""
    try:
        kind = jax.devices()[0].device_kind.lower()
    except Exception:
        return 1
    return 2 if any(tag in kind for tag in ("v4", "v5p", "v7", "7x")) else 1


_LANE_TILE_CAP = 8192  # per-grid-step batch tile cap (review: raise 2048 -> 8192)


def _pick_block_b(B, num_cores, cap=_LANE_TILE_CAP):
    if num_cores >= 2 and B > 256:
        # Even number of balanced, 128-aligned tiles so both TCs get equal work;
        # >= 2 steps per core once B exceeds 2*cap (pipeline overlap).
        steps_per_core = max(1, -(-B // (2 * cap)))
        n_steps = 2 * steps_per_core
        return min(_round_up(-(-B // n_steps), 128), B)
    # Single TensorCore (v5e/v6e): the grid is a sequential loop, every extra
    # step costs ~0.35 us -> one big tile unless it exceeds the cap.
    if B <= cap:
        return B
    n_steps = -(-B // cap)
    return min(_round_up(-(-B // n_steps), 128), B)


def _resolve_block_b(B, block_b, num_cores):
    bb = block_b if block_b is not None else _pick_block_b(B, num_cores)
    bb = max(1, min(bb, B))
    if bb < B:
        bb = min(_round_up(bb, 128), B)   # lane/sublane alignment for partial blocks
    return bb


def _vmem_limit_bytes(bb, D, H, itemsize):
    # Explicit budget (review): double-buffered in/out tiles + f32 intermediates
    # + resident weights + slack.  Floor at 32 MiB, cap at 48 MiB (< v7x 64 MiB).
    tile = bb * D * itemsize
    hidden = bb * H * 4
    weights = (D * H + H + H * D + D) * 4
    need = 4 * tile + 6 * hidden + weights + (2 << 20)
    return int(min(max(need, 32 << 20), 48 << 20))


_VMEM_RESIDENT = pl.BlockSpec(memory_space=pltpu.MemorySpace.VMEM)


# -------------------------------- wrappers ------------------------------------

def hybrid_dynamics(t, x, w1, b1, w2, b2, *, mxu_dtype=jnp.bfloat16,
                    block_b=None, num_cores=None):
    """HybridDynamics.forward(t, x): dx = latent(t, x) - x, x shaped (B, D).

    One pallas_call, no wrapper transposes.  The latent MLP is autonomous, so
    `t` is accepted only for API parity with the PyTorch module.
    """
    del t
    B, D = x.shape
    H = w1.shape[1]
    cores = _num_tensorcores() if num_cores is None else num_cores
    bb = _resolve_block_b(B, block_b, cores)
    grid = (pl.cdiv(B, bb),)

    kernel = functools.partial(_dx_bd_kernel, mxu_dtype=mxu_dtype)
    return pl.pallas_call(
        kernel,
        out_shape=jax.ShapeDtypeStruct((B, D), x.dtype),
        grid_spec=pltpu.PrefetchScalarGridSpec(
            num_scalar_prefetch=0,
            grid=grid,
            in_specs=[
                pl.BlockSpec((bb, D), lambda i: (i, 0)),   # x block (batch rows)
                _VMEM_RESIDENT,                            # W1 (D, H)
                _VMEM_RESIDENT,                            # b1 (1, H)
                _VMEM_RESIDENT,                            # W2 (H, D)
                _VMEM_RESIDENT,                            # b2 (1, D)
            ],
            out_specs=pl.BlockSpec((bb, D), lambda i: (i, 0)),
        ),
        compiler_params=pltpu.CompilerParams(
            dimension_semantics=("parallel",),
            vmem_limit_bytes=_vmem_limit_bytes(bb, D, H, x.dtype.itemsize),
        ),
    )(x, w1, b1.reshape(1, H), w2, b2.reshape(1, D))


def hybrid_dynamics_lane_dense(t, xt, w1, b1, w2, b2, *, mxu_dtype=jnp.bfloat16,
                               block_b=None, num_cores=None):
    """Same dynamics with the state kept persistently lane-dense: xt is (D, B).

    Intended for solver loops that maintain (D, B) state end-to-end, so no
    transpose ever touches HBM.  (The tiny weight transposes below are ~5 KB;
    a real integrator would precompute them once outside the loop.)
    """
    del t
    D, B = xt.shape
    H = w1.shape[1]
    cores = _num_tensorcores() if num_cores is None else num_cores
    bb = _resolve_block_b(B, block_b, cores)
    grid = (pl.cdiv(B, bb),)

    kernel = functools.partial(_dx_db_kernel, mxu_dtype=mxu_dtype)
    return pl.pallas_call(
        kernel,
        out_shape=jax.ShapeDtypeStruct((D, B), xt.dtype),
        grid_spec=pltpu.PrefetchScalarGridSpec(
            num_scalar_prefetch=0,
            grid=grid,
            in_specs=[
                pl.BlockSpec((D, bb), lambda i: (0, i)),   # x^T block (lane-dense)
                _VMEM_RESIDENT,                            # W1^T (H, D)
                _VMEM_RESIDENT,                            # b1   (H, 1)
                _VMEM_RESIDENT,                            # W2^T (D, H)
                _VMEM_RESIDENT,                            # b2   (D, 1)
            ],
            out_specs=pl.BlockSpec((D, bb), lambda i: (0, i)),
        ),
        compiler_params=pltpu.CompilerParams(
            dimension_semantics=("parallel",),
            vmem_limit_bytes=_vmem_limit_bytes(bb, D, H, xt.dtype.itemsize),
        ),
    )(xt, w1.T, b1.reshape(H, 1), w2.T, b2.reshape(D, 1))


def hybrid_rk4_step_lane_dense(t, xt, dt, w1, b1, w2, b2, *,
                               mxu_dtype=jnp.bfloat16, block_b=None,
                               num_cores=None):
    """One classical RK4 step of dx/dt = latent(x) - x, fused into a SINGLE
    pallas_call (4 derivative evaluations share VMEM-resident weights and the
    state tile).  xt is lane-dense (D, B); dt is a static Python float.

    # TODO(synk): pass dt through an SMEM scalar ref (and add adaptive dopri
    # stages) so the step size can change without recompiling.
    """
    del t
    D, B = xt.shape
    H = w1.shape[1]
    cores = _num_tensorcores() if num_cores is None else num_cores
    bb = _resolve_block_b(B, block_b, cores)
    grid = (pl.cdiv(B, bb),)

    kernel = functools.partial(_rk4_db_kernel, dt=float(dt), mxu_dtype=mxu_dtype)
    return pl.pallas_call(
        kernel,
        out_shape=jax.ShapeDtypeStruct((D, B), xt.dtype),
        grid_spec=pltpu.PrefetchScalarGridSpec(
            num_scalar_prefetch=0,
            grid=grid,
            in_specs=[
                pl.BlockSpec((D, bb), lambda i: (0, i)),
                _VMEM_RESIDENT, _VMEM_RESIDENT, _VMEM_RESIDENT, _VMEM_RESIDENT,
            ],
            out_specs=pl.BlockSpec((D, bb), lambda i: (0, i)),
        ),
        compiler_params=pltpu.CompilerParams(
            dimension_semantics=("parallel",),
            vmem_limit_bytes=_vmem_limit_bytes(bb, D, H, xt.dtype.itemsize),
        ),
    )(xt, w1.T, b1.reshape(H, 1), w2.T, b2.reshape(D, 1))


# ------------------------------- references -----------------------------------

def _reference_dx(x, w1, b1, w2, b2, mxu_dtype=jnp.float32):
    xm = x.astype(mxu_dtype)
    h = jnp.tanh(jnp.dot(xm, w1.astype(mxu_dtype),
                         preferred_element_type=jnp.float32) + b1)
    latent = jnp.dot(h.astype(mxu_dtype), w2.astype(mxu_dtype),
                     preferred_element_type=jnp.float32) + b2
    return latent - x


def _reference_rk4(x, dt, w1, b1, w2, b2, mxu_dtype=jnp.float32):
    f = lambda y: _reference_dx(y, w1, b1, w2, b2, mxu_dtype)
    k1 = f(x)
    k2 = f(x + 0.5 * dt * k1)
    k3 = f(x + 0.5 * dt * k2)
    k4 = f(x + dt * k3)
    return x + (dt / 6.0) * (k1 + 2.0 * k2 + 2.0 * k3 + k4)


if __name__ == "__main__":
    key = jax.random.PRNGKey(0)
    B, D, H = 256, 8, 32  # batch, repressilator state dim, latent-MLP hidden dim
    kx, kw1, kb1, kw2, kb2 = jax.random.split(key, 5)
    x = jax.random.normal(kx, (B, D), dtype=jnp.float32)
    w1 = jax.random.normal(kw1, (D, H), dtype=jnp.float32) * 0.1
    b1 = jax.random.normal(kb1, (H,), dtype=jnp.float32) * 0.1
    w2 = jax.random.normal(kw2, (H, D), dtype=jnp.float32) * 0.1
    b2 = jax.random.normal(kb2, (D,), dtype=jnp.float32) * 0.1
    t = jnp.float32(0.0)
    dt = 0.05

    ref_f32 = _reference_dx(x, w1, b1, w2, b2, jnp.float32)
    ref_bf16 = _reference_dx(x, w1, b1, w2, b2, jnp.bfloat16)

    # (a) PyTorch-parity (B, D) API, exact f32 MXU path, auto (single-step) tiling.
    out_f32 = jax.block_until_ready(
        hybrid_dynamics(t, x, w1, b1, w2, b2, mxu_dtype=jnp.float32))
    assert out_f32.shape == (B, D) and out_f32.dtype == x.dtype
    assert jnp.allclose(out_f32, ref_f32, atol=1e-5, rtol=1e-5), "f32 path mismatch"

    # (b) default bf16 MXU operands + forced multi-step grid (blocked path).
    out_bf16 = jax.block_until_ready(
        hybrid_dynamics(t, x, w1, b1, w2, b2, block_b=128))
    assert jnp.allclose(out_bf16, ref_bf16, atol=1e-4, rtol=1e-4), "bf16 path mismatch"
    assert jnp.allclose(out_bf16, ref_f32, atol=3e-2, rtol=3e-2), "bf16 drift too large"

    # (c) lane-dense (D, B) solver-loop layout: no transposes anywhere.
    xt = x.T
    out_ld = jax.block_until_ready(
        hybrid_dynamics_lane_dense(t, xt, w1, b1, w2, b2, mxu_dtype=jnp.float32))
    assert out_ld.shape == (D, B)
    assert jnp.allclose(out_ld.T, ref_f32, atol=1e-5, rtol=1e-5), "lane-dense mismatch"

    # (d) fused RK4 step: 4 derivative evaluations in ONE pallas_call.
    ref_rk4 = _reference_rk4(x, dt, w1, b1, w2, b2, jnp.bfloat16)
    out_rk4 = jax.block_until_ready(
        hybrid_rk4_step_lane_dense(t, xt, dt, w1, b1, w2, b2))
    assert out_rk4.shape == (D, B)
    assert jnp.allclose(out_rk4.T, ref_rk4, atol=1e-4, rtol=1e-4), "RK4 mismatch"

    print("KERNEL_OK")
</pallas_src>

<mosaic_0001>
module attributes {stable_mosaic.version = 11 : i64} {
  func.func @_dx_bd_kernel(%arg0: i32, %arg1: memref<256x8xf32, #tpu.memory_space<vmem>>, %arg2: memref<8x32xf32, #tpu.memory_space<vmem>>, %arg3: memref<1x32xf32, #tpu.memory_space<vmem>>, %arg4: memref<32x8xf32, #tpu.memory_space<vmem>>, %arg5: memref<1x8xf32, #tpu.memory_space<vmem>>, %arg6: memref<256x8xf32, #tpu.memory_space<vmem>>) attributes {dimension_semantics = [#tpu.dimension_semantics<parallel>], iteration_bounds = array<i64: 1>, scalar_prefetch = 0 : i64, scratch_operands = 0 : i64, tpu.core_type = #tpu.core_type<tc>, window_params = [{transform_indices = @transform_0, window_bounds = array<i64: 256, 8>}, {pipeline_mode = #tpu.pipeline_mode<synchronous>, transform_indices = @transform_1, window_bounds = array<i64: 8, 32>}, {pipeline_mode = #tpu.pipeline_mode<synchronous>, transform_indices = @transform_2, window_bounds = array<i64: 1, 32>}, {pipeline_mode = #tpu.pipeline_mode<synchronous>, transform_indices = @transform_3, window_bounds = array<i64: 32, 8>}, {pipeline_mode = #tpu.pipeline_mode<synchronous>, transform_indices = @transform_4, window_bounds = array<i64: 1, 8>}, {transform_indices = @transform_5, window_bounds = array<i64: 256, 8>}]} {
    %c0 = arith.constant 0 : index
    %c0_0 = arith.constant 0 : index
    %0 = vector.load %arg1[%c0, %c0_0] : memref<256x8xf32, #tpu.memory_space<vmem>>, vector<256x8xf32>
    %c0_1 = arith.constant 0 : index
    %c0_2 = arith.constant 0 : index
    %1 = vector.load %arg2[%c0_1, %c0_2] : memref<8x32xf32, #tpu.memory_space<vmem>>, vector<8x32xf32>
    %c0_3 = arith.constant 0 : index
    %c0_4 = arith.constant 0 : index
    %2 = vector.load %arg3[%c0_3, %c0_4] : memref<1x32xf32, #tpu.memory_space<vmem>>, vector<1x32xf32>
    %c0_5 = arith.constant 0 : index
    %c0_6 = arith.constant 0 : index
    %3 = vector.load %arg4[%c0_5, %c0_6] : memref<32x8xf32, #tpu.memory_space<vmem>>, vector<32x8xf32>
    %c0_7 = arith.constant 0 : index
    %c0_8 = arith.constant 0 : index
    %4 = vector.load %arg5[%c0_7, %c0_8] : memref<1x8xf32, #tpu.memory_space<vmem>>, vector<1x8xf32>
    %cst = arith.constant dense<0.000000e+00> : vector<256x32xf32>
    %5 = tpu.matmul %0, %1, %cst {dimension_numbers = #tpu.dot_dimension_numbers<[1], [0], [0], [1], [0, 0, 1, 1], [], []>} : vector<256x8xf32>, vector<8x32xf32>, vector<256x32xf32> -> vector<256x32xf32>
    %6 = vector.broadcast %2 : vector<1x32xf32> to vector<256x32xf32>
    %7 = arith.addf %5, %6 : vector<256x32xf32>
    %8 = math.tanh %7 : vector<256x32xf32>
    %cst_9 = arith.constant dense<0.000000e+00> : vector<256x8xf32>
    %9 = tpu.matmul %8, %3, %cst_9 {dimension_numbers = #tpu.dot_dimension_numbers<[1], [0], [0], [1], [0, 0, 1, 1], [], []>} : vector<256x32xf32>, vector<32x8xf32>, vector<256x8xf32> -> vector<256x8xf32>
    %10 = vector.broadcast %4 : vector<1x8xf32> to vector<256x8xf32>
    %11 = arith.addf %9, %10 : vector<256x8xf32>
    %12 = arith.subf %11, %0 : vector<256x8xf32>
    %c0_10 = arith.constant 0 : index
    %c0_11 = arith.constant 0 : index
    %13 = vector.load %arg6[%c0_10, %c0_11] : memref<256x8xf32, #tpu.memory_space<vmem>>, vector<256x8xf32>
    tpu.vector_store %arg6[%c0_10, %c0_11], %12 {strides = array<i32>} : memref<256x8xf32, #tpu.memory_space<vmem>>, vector<256x8xf32>,
    return
  }
  func.func @transform_0(%arg0: i32) -> (i32, i32) {
    %c0_i32 = arith.constant 0 : i32
    %c0_i32_0 = arith.constant 0 : i32
    return %arg0, %c0_i32 : i32, i32
  }
  func.func @transform_1(%arg0: i32) -> (i32, i32) {
    %c0_i32 = arith.constant 0 : i32
    %c0_i32_0 = arith.constant 0 : i32
    %c0_i32_1 = arith.constant 0 : i32
    return %c0_i32, %c0_i32_0 : i32, i32
  }
  func.func @transform_2(%arg0: i32) -> (i32, i32) {
    %c0_i32 = arith.constant 0 : i32
    %c0_i32_0 = arith.constant 0 : i32
    %c0_i32_1 = arith.constant 0 : i32
    return %c0_i32, %c0_i32_0 : i32, i32
  }
  func.func @transform_3(%arg0: i32) -> (i32, i32) {
    %c0_i32 = arith.constant 0 : i32
    %c0_i32_0 = arith.constant 0 : i32
    %c0_i32_1 = arith.constant 0 : i32
    return %c0_i32, %c0_i32_0 : i32, i32
  }
  func.func @transform_4(%arg0: i32) -> (i32, i32) {
    %c0_i32 = arith.constant 0 : i32
    %c0_i32_0 = arith.constant 0 : i32
    %c0_i32_1 = arith.constant 0 : i32
    return %c0_i32, %c0_i32_0 : i32, i32
  }
  func.func @transform_5(%arg0: i32) -> (i32, i32) {
    %c0_i32 = arith.constant 0 : i32
    %c0_i32_0 = arith.constant 0 : i32
    return %arg0, %c0_i32 : i32, i32
  }
}

</mosaic_0001>

<bundles_post_ra>
// kernel: tpu_custom_call.1
= control target key start
LH: loop header
LB: loop body
LE: loop exit
PB: predicated region body
PF: predicated region fallthrough
CT: control target
= control target key end

     0   :  { %vm62_vm0 = vcmask 64512   ;;  %vm307_vm1 = vcmask 261120   ;;  %s1255_s1 = inlined_call_operand.vmem [shape: f32[8,32], index: 1, kind: input, shape index: {}]   ;;  %s1256_s0 = inlined_call_operand.vmem [shape: f32[256,8], index: 0, kind: input, shape index: {}]   ;;  %s1257_s2 = inlined_call_operand.vmem [shape: f32[1,32], index: 2, kind: input, shape index: {}]   ;;  %s1258_s3 = inlined_call_operand.vmem [shape: f32[32,8], index: 3, kind: input, shape index: {}]   ;;  %s1259_s4 = inlined_call_operand.vmem [shape: f32[1,8], index: 4, kind: input, shape index: {}]   ;;  %s1260_s5 = inlined_call_operand.vmem [shape: f32[256,8], index: 5, kind: output, shape index: {}]  }
   0x1   :  { %v52_v0 = vld [vmem:[%s1255_s1] sm:$0xff]  ;;  %v763_v2 = vld [vmem:[%s1256_s0 + $0x8] sm:$0xff]  ;;  %v770_v3 = vld [vmem:[%s1256_s0 + $0x10] sm:$0xff] }
   0x2   :  { %v756_v1 = vld [vmem:[%s1256_s0] sm:$0xff]  ;;  %174 = vmatpush.msra.mxu0 %v52_v0  ;;  %649 = vmatpush.msra.mxu3 %v52_v0  ;;  %v777_v4 = vld [vmem:[%s1256_s0 + $0x18] sm:$0xff]  ;;  %v791_v6 = vld [vmem:[%s1256_s0 + $0x28] sm:$0xff] }
   0x3   :  { %585 = vmatmul.msk.f32.vlgmr.msra.gmra.mxu0 %vm62_vm0, %v756_v1  ;;  %v784_v5 = vld [vmem:[%s1256_s0 + $0x20] sm:$0xff]  ;;  %v798_v7 = vld [vmem:[%s1256_s0 + $0x30] sm:$0xff]  ;;  %v805_v8 = vld [vmem:[%s1256_s0 + $0x38] sm:$0xff] }
   0x4   :  { %v812_v9 = vld [vmem:[%s1256_s0 + $0x40] sm:$0xff]  ;;  %v819_v10 = vld [vmem:[%s1256_s0 + $0x48] sm:$0xff]  ;;  %v826_v11 = vld [vmem:[%s1256_s0 + $0x50] sm:$0xff] }
   0x5   :  { %v833_v12 = vld [vmem:[%s1256_s0 + $0x58] sm:$0xff]  ;;  %v840_v13 = vld [vmem:[%s1256_s0 + $0x60] sm:$0xff]  ;;  %v850_v15 = vld [vmem:[%s1256_s0 + $0x88] sm:$0xff] }
   0x6   :  { %v57_v14 = vld [vmem:[%s1258_s3 + $0x18] sm:$0xff]  ;;  %v56_v16 = vld [vmem:[%s1258_s3 + $0x10] sm:$0xff]  ;;  %602 = vmatmul.msk.f32.vlgmr.msra.gmra.mxu3 %vm62_vm0, %v850_v15  ;;  %v55_v17 = vld [vmem:[%s1258_s3 + $0x8] sm:$0xff] }
   0x7   :  { %416 = vmatpush.msra.mxu1 %v57_v14  ;;  %650 = vmatpush.msra.mxu2 %v57_v14  ;;  %v863_v18 = vld [vmem:[%s1256_s0 + $0x68] sm:$0xff]  ;;  %v54_v19 = vld [vmem:[%s1258_s3] sm:$0xff]  ;;  %v873_v20 = vld [vmem:[%s1256_s0 + $0x90] sm:$0xff] }
   0x8   :  { %v880_v21 = vld [vmem:[%s1256_s0 + $0x70] sm:$0xff]  ;;  %v887_v22 = vld [vmem:[%s1256_s0 + $0x98] sm:$0xff]  ;;  %v901_v24 = vld [vmem:[%s1256_s0 + $0xa0] sm:$0xff] }
   0x9   :  { %417 = vmatpush.msra.mxu1 %v56_v16  ;;  %651 = vmatpush.msra.mxu2 %v56_v16  ;;  %v894_v23 = vld [vmem:[%s1256_s0 + $0x78] sm:$0xff]  ;;  %v908_v25 = vld [vmem:[%s1257_s2] ss:$0 sm:$0xff]  ;;  %v921_v29 = vld [vmem:[%s1256_s0 + $0xa8] sm:$0xff] }
   0xa   :  { %v913_v27 = vld [vmem:[%s1256_s0 + $0x80] sm:$0xff]  ;;  %v930_v33 = vld [vmem:[%s1256_s0 + $0xb0] sm:$0xff]  ;;  %v939_v37 = vld [vmem:[%s1256_s0 + $0xb8] sm:$0xff] }
   0xb   :  { %586 = vmatmul.msk.f32.gmra.mxu0 %vm62_vm0, %v763_v2  ;;  %418 = vmatpush.msra.mxu1 %v55_v17  ;;  %v948_v41 = vld [vmem:[%s1256_s0 + $0xc0] sm:$0xff]  ;;  %v957_v45 = vld [vmem:[%s1256_s0 + $0xc8] sm:$0xff]  ;;  %v966_v49 = vld [vmem:[%s1256_s0 + $0xd0] sm:$0xff] }
   0xc   :  { %652 = vmatpush.msra.mxu2 %v55_v17  ;;  %v975_v53 = vld [vmem:[%s1256_s0 + $0xd8] sm:$0xff]  ;;  %v984_v57 = vld [vmem:[%s1256_s0 + $0xe0] sm:$0xff]  ;;  %v993_v61 = vld [vmem:[%s1256_s0 + $0xe8] sm:$0xff] }
   0xd   :  { %419 = vmatpush.msra.mxu1 %v54_v19  ;;  %v1002_v14 = vld [vmem:[%s1256_s0 + $0xf0] sm:$0xff] }
   0xe   :  { %653 = vmatpush.msra.mxu2 %v54_v19  ;;  %603 = vmatmul.msk.f32.gmra.mxu3 %vm62_vm0, %v873_v20 }
  0x13   :  { %587 = vmatmul.msk.f32.gmra.mxu0 %vm62_vm0, %v770_v3 }
  0x16   :  { %604 = vmatmul.msk.f32.gmra.mxu3 %vm62_vm0, %v887_v22 }
  0x1b   :  { %588 = vmatmul.msk.f32.gmra.mxu0 %vm62_vm0, %v777_v4 }
  0x1e   :  { %605 = vmatmul.msk.f32.gmra.mxu3 %vm62_vm0, %v901_v24 }
  0x23   :  { %589 = vmatmul.msk.f32.gmra.mxu0 %vm62_vm0, %v784_v5 }
  0x26   :  { %606 = vmatmul.msk.f32.gmra.mxu3 %vm62_vm0, %v921_v29 }
  0x2b   :  { %590 = vmatmul.msk.f32.gmra.mxu0 %vm62_vm0, %v791_v6 }
  0x2e   :  { %607 = vmatmul.msk.f32.gmra.mxu3 %vm62_vm0, %v930_v33 }
  0x33   :  { %591 = vmatmul.msk.f32.gmra.mxu0 %vm62_vm0, %v798_v7 }
  0x36   :  { %608 = vmatmul.msk.f32.gmra.mxu3 %vm62_vm0, %v939_v37 }
  0x3b   :  { %592 = vmatmul.msk.f32.gmra.mxu0 %vm62_vm0, %v805_v8 }
  0x3e   :  { %609 = vmatmul.msk.f32.gmra.mxu3 %vm62_vm0, %v948_v41 }
  0x43   :  { %593 = vmatmul.msk.f32.gmra.mxu0 %vm62_vm0, %v812_v9 }
  0x46   :  { %610 = vmatmul.msk.f32.gmra.mxu3 %vm62_vm0, %v957_v45 }
  0x4b   :  { %594 = vmatmul.msk.f32.gmra.mxu0 %vm62_vm0, %v819_v10 }
  0x4e   :  { %611 = vmatmul.msk.f32.gmra.mxu3 %vm62_vm0, %v966_v49 }
  0x53   :  { %595 = vmatmul.msk.f32.gmra.mxu0 %vm62_vm0, %v826_v11 }
  0x56   :  { %612 = vmatmul.msk.f32.gmra.mxu3 %vm62_vm0, %v975_v53 }
  0x5b   :  { %596 = vmatmul.msk.f32.gmra.mxu0 %vm62_vm0, %v833_v12 }
  0x5e   :  { %613 = vmatmul.msk.f32.gmra.mxu3 %vm62_vm0, %v984_v57 }
  0x63   :  { %597 = vmatmul.msk.f32.gmra.mxu0 %vm62_vm0, %v840_v13 }
  0x66   :  { %614 = vmatmul.msk.f32.gmra.mxu3 %vm62_vm0, %v993_v61 }
  0x6b   :  { %598 = vmatmul.msk.f32.gmra.mxu0 %vm62_vm0, %v863_v18 }
  0x6e   :  { %615 = vmatmul.msk.f32.gmra.mxu3 %vm62_vm0, %v1002_v14 }
  0x73   :  { %599 = vmatmul.msk.f32.gmra.mxu0 %vm62_vm0, %v880_v21 }
  0x7b   :  { %600 = vmatmul.msk.f32.gmra.mxu0 %vm62_vm0, %v894_v23 }
  0x80   :  { %v176_v26 = vpop.f32.mrf.mxu0 }
  0x81   :  { %v177_v28 = vadd.f32 %v908_v25, %v176_v26  ;;  %v1011_v26 = vld [vmem:[%s1256_s0 + $0xf8] sm:$0xff] }
  0x82   :  { %616 = vmatmul.msk.f32.gmra.mxu3 %vm62_vm0, %v1011_v26 }
  0x83   :  { %656 = vtanh.f32 %v177_v28  ;;  %601 = vmatmul.msk.f32.gmra.mxu0 %vm62_vm0, %v913_v27 }
  0x88   :  { %v179_v30 = vpop.f32.mrf.mxu0 }
  0x89   :  { %v657_v31 = vpop.eup %656  ;;  %v180_v32 = vadd.f32 %v908_v25, %v179_v30 }
  0x8a   :  { %617 = vmatmul.msk.f32.vlgmr.msra.gmra.mxu1 %vm307_vm1, %v657_v31 }
  0x8b   :  { %658 = vtanh.f32 %v180_v32 }
  0x90   :  { %v182_v34 = vpop.f32.mrf.mxu0 }
  0x91   :  { %v659_v35 = vpop.eup %658  ;;  %v183_v36 = vadd.f32 %v908_v25, %v182_v34 }
  0x92   :  { %618 = vmatmul.msk.f32.gmra.mxu1 %vm307_vm1, %v659_v35 }
  0x93   :  { %660 = vtanh.f32 %v183_v36 }
  0x98   :  { %v185_v38 = vpop.f32.mrf.mxu0 }
  0x99   :  { %v661_v39 = vpop.eup %660  ;;  %v186_v40 = vadd.f32 %v908_v25, %v185_v38  ;;  %v227_v38 = vpop.f32.mrf.mxu3 }
  0x9a   :  { %619 = vmatmul.msk.f32.gmra.mxu1 %vm307_vm1, %v661_v39 }
  0x9b   :  { %662 = vtanh.f32 %v186_v40 }
  0xa0   :  { %v188_v42 = vpop.f32.mrf.mxu0 }
  0xa1   :  { %v663_v43 = vpop.eup %662  ;;  %v189_v44 = vadd.f32 %v908_v25, %v188_v42 }
  0xa2   :  { %620 = vmatmul.msk.f32.gmra.mxu1 %vm307_vm1, %v663_v43  ;;  %v230_v43 = vpop.f32.mrf.mxu3 }
  0xa3   :  { %664 = vtanh.f32 %v189_v44 }
  0xa8   :  { %v191_v46 = vpop.f32.mrf.mxu0 }
  0xa9   :  { %v665_v47 = vpop.eup %664  ;;  %v192_v48 = vadd.f32 %v908_v25, %v191_v46 }
  0xaa   :  { %621 = vmatmul.msk.f32.gmra.mxu1 %vm307_vm1, %v665_v47 }
  0xab   :  { %666 = vtanh.f32 %v192_v48 }
  0xb0   :  { %v194_v50 = vpop.f32.mrf.mxu0 }
  0xb1   :  { %v667_v51 = vpop.eup %666  ;;  %v195_v52 = vadd.f32 %v908_v25, %v194_v50 }
  0xb2   :  { %622 = vmatmul.msk.f32.gmra.mxu1 %vm307_vm1, %v667_v51  ;;  %v233_v51 = vpop.f32.mrf.mxu3 }
  0xb3   :  { %668 = vtanh.f32 %v195_v52 }
  0xb8   :  { %v197_v54 = vpop.f32.mrf.mxu0 }
  0xb9   :  { %v669_v55 = vpop.eup %668  ;;  %v198_v56 = vadd.f32 %v908_v25, %v197_v54 }
  0xba   :  { %623 = vmatmul.msk.f32.gmra.mxu1 %vm307_vm1, %v669_v55 }
  0xbb   :  { %670 = vtanh.f32 %v198_v56  ;;  %v1030_v56 = vld [vmem:[%s1259_s4] ss:$0 sm:$0xff] }
  0xc0   :  { %v200_v58 = vpop.f32.mrf.mxu0 }
  0xc1   :  { %v671_v59 = vpop.eup %670  ;;  %v201_v60 = vadd.f32 %v908_v25, %v200_v58  ;;  %v236_v58 = vpop.f32.mrf.mxu3 }
  0xc2   :  { %624 = vmatmul.msk.f32.gmra.mxu1 %vm307_vm1, %v671_v59  ;;  %v228_v59 = vadd.f32 %v908_v25, %v227_v38 }
  0xc3   :  { %672 = vtanh.f32 %v201_v60 }
  0xc8   :  { %v203_v62 = vpop.f32.mrf.mxu0 }
  0xc9   :  { %v673_v63 = vpop.eup %672  ;;  %v204_v0 = vadd.f32 %v908_v25, %v203_v62 }
  0xca   :  { %625 = vmatmul.msk.f32.gmra.mxu1 %vm307_vm1, %v673_v63 }
  0xcb   :  { %674 = vtanh.f32 %v204_v0 }
  0xd0   :  { %v206_v16 = vpop.f32.mrf.mxu0 }
  0xd1   :  { %v675_v17 = vpop.eup %674  ;;  %v207_v19 = vadd.f32 %v908_v25, %v206_v16  ;;  %v231_v16 = vadd.f32 %v908_v25, %v230_v43 }
  0xd2   :  { %626 = vmatmul.msk.f32.gmra.mxu1 %vm307_vm1, %v675_v17  ;;  %v239_v17 = vpop.f32.mrf.mxu3 }
  0xd3   :  { %676 = vtanh.f32 %v207_v19 }
  0xd8   :  { %v209_v28 = vpop.f32.mrf.mxu0 }
  0xd9   :  { %v677_v30 = vpop.eup %676  ;;  %v210_v31 = vadd.f32 %v908_v25, %v209_v28 }
  0xda   :  { %627 = vmatmul.msk.f32.gmra.mxu1 %vm307_vm1, %v677_v30 }
  0xdb   :  { %678 = vtanh.f32 %v210_v31 }
  0xe0   :  { %v212_v32 = vpop.f32.mrf.mxu0 }
  0xe1   :  { %v679_v34 = vpop.eup %678  ;;  %v213_v35 = vadd.f32 %v908_v25, %v212_v32 }
  0xe2   :  { %628 = vmatmul.msk.f32.gmra.mxu1 %vm307_vm1, %v679_v34 }
  0xe3   :  { %680 = vtanh.f32 %v213_v35 }
  0xe8   :  { %v215_v36 = vpop.f32.mrf.mxu0 }
  0xe9   :  { %v681_v39 = vpop.eup %680  ;;  %v216_v40 = vadd.f32 %v908_v25, %v215_v36  ;;  %v242_v36 = vpop.f32.mrf.mxu3 }
  0xea   :  { %629 = vmatmul.msk.f32.gmra.mxu1 %vm307_vm1, %v681_v39 }
  0xeb   :  { %682 = vtanh.f32 %v216_v40 }
  0xf0   :  { %v218_v42 = vpop.f32.mrf.mxu0 }
  0xf1   :  { %v683_v44 = vpop.eup %682  ;;  %v219_v46 = vadd.f32 %v908_v25, %v218_v42 }
  0xf2   :  { %630 = vmatmul.msk.f32.gmra.mxu1 %vm307_vm1, %v683_v44  ;;  %v245_v44 = vpop.f32.mrf.mxu3 }
  0xf3   :  { %684 = vtanh.f32 %v219_v46 }
  0xf8   :  { %v221_v47 = vpop.f32.mrf.mxu0 }
  0xf9   :  { %v685_v48 = vpop.eup %684  ;;  %v222_v50 = vadd.f32 %v908_v25, %v221_v47 }
  0xfa   :  { %631 = vmatmul.msk.f32.gmra.mxu1 %vm307_vm1, %v685_v48 }
  0xfb   :  { %686 = vtanh.f32 %v222_v50 }
 0x100   :  { %v224_v52 = vpop.f32.mrf.mxu0 }
 0x101   :  { %v687_v54 = vpop.eup %686  ;;  %v225_v55 = vadd.f32 %v908_v25, %v224_v52 }
 0x102   :  { %632 = vmatmul.msk.f32.gmra.mxu1 %vm307_vm1, %v687_v54 }
 0x103   :  { %688 = vtanh.f32 %v225_v55 }
 0x104   :  { %690 = vtanh.f32 %v228_v59 }
 0x105   :  { %692 = vtanh.f32 %v231_v16 }
 0x107   :  { %v421_v60 = vpop.f32.mrf.mxu1 }
 0x108   :  { %v422_v62 = vadd.f32 %v1030_v56, %v421_v60 }
 0x109   :  { %v689_v63 = vpop.eup %688 }
 0x10a   :  { %v517_v0 = vsub.f32 %v422_v62, %v756_v1  ;;  %633 = vmatmul.msk.f32.vlgmr.msra.gmra.mxu2 %vm307_vm1, %v689_v63  ;;  %v691_v19 = vpop.eup %690  ;;  %v234_v1 = vadd.f32 %v908_v25, %v233_v51  ;;  %v243_v51 = vadd.f32 %v908_v25, %v242_v36 }
 0x10b   :  { %v693_v32 = vpop.eup %692 }
 0x10c   :  { %549 = vst.msk [vmem:[%s1260_s5] sm:$0xff] %vm62_vm0, %v517_v0  ;;  %694 = vtanh.f32 %v234_v1 }
 0x10f   :  { %v424_v28 = vpop.f32.mrf.mxu1 }
 0x110   :  { %v425_v30 = vadd.f32 %v1030_v56, %v424_v28 }
 0x112   :  { %v518_v31 = vsub.f32 %v425_v30, %v763_v2  ;;  %634 = vmatmul.msk.f32.gmra.mxu2 %vm307_vm1, %v691_v19  ;;  %v237_v2 = vadd.f32 %v908_v25, %v236_v58  ;;  %v695_v39 = vpop.eup %694 }
 0x114   :  { %550 = vst.msk [vmem:[%s1260_s5 + $0x8] sm:$0xff] %vm62_vm0, %v518_v31  ;;  %696 = vtanh.f32 %v237_v2 }
 0x117   :  { %v427_v34 = vpop.f32.mrf.mxu1 }
 0x118   :  { %v428_v35 = vadd.f32 %v1030_v56, %v427_v34 }
 0x11a   :  { %v519_v38 = vsub.f32 %v428_v35, %v770_v3  ;;  %635 = vmatmul.msk.f32.gmra.mxu2 %vm307_vm1, %v693_v32  ;;  %v240_v3 = vadd.f32 %v908_v25, %v239_v17  ;;  %v697_v46 = vpop.eup %696 }
 0x11c   :  { %551 = vst.msk [vmem:[%s1260_s5 + $0x10] sm:$0xff] %vm62_vm0, %v519_v38  ;;  %698 = vtanh.f32 %v240_v3 }
 0x11d   :  { %700 = vtanh.f32 %v243_v51 }
 0x11f   :  { %v430_v40 = vpop.f32.mrf.mxu1 }
 0x120   :  { %v431_v42 = vadd.f32 %v1030_v56, %v430_v40 }
 0x122   :  { %v520_v43 = vsub.f32 %v431_v42, %v777_v4  ;;  %636 = vmatmul.msk.f32.gmra.mxu2 %vm307_vm1, %v695_v39  ;;  %v248_v4 = vpop.f32.mrf.mxu3  ;;  %v699_v52 = vpop.eup %698 }
 0x123   :  { %v701_v60 = vpop.eup %700 }
 0x124   :  { %552 = vst.msk [vmem:[%s1260_s5 + $0x18] sm:$0xff] %vm62_vm0, %v520_v43 }
 0x127   :  { %v433_v47 = vpop.f32.mrf.mxu1 }
 0x128   :  { %v434_v48 = vadd.f32 %v1030_v56, %v433_v47 }
 0x12a   :  { %v521_v50 = vsub.f32 %v434_v48, %v784_v5  ;;  %637 = vmatmul.msk.f32.gmra.mxu2 %vm307_vm1, %v697_v46  ;;  %v246_v5 = vadd.f32 %v908_v25, %v245_v44  ;;  %v251_v59 = vpop.f32.mrf.mxu3 }
 0x12c   :  { %553 = vst.msk [vmem:[%s1260_s5 + $0x20] sm:$0xff] %vm62_vm0, %v521_v50  ;;  %702 = vtanh.f32 %v246_v5 }
 0x12f   :  { %v436_v54 = vpop.f32.mrf.mxu1 }
 0x130   :  { %v437_v55 = vadd.f32 %v1030_v56, %v436_v54 }
 0x132   :  { %v522_v58 = vsub.f32 %v437_v55, %v791_v6  ;;  %638 = vmatmul.msk.f32.gmra.mxu2 %vm307_vm1, %v699_v52  ;;  %v249_v6 = vadd.f32 %v908_v25, %v248_v4  ;;  %v703_v16 = vpop.eup %702  ;;  %v254_v28 = vpop.f32.mrf.mxu3 }
 0x134   :  { %554 = vst.msk [vmem:[%s1260_s5 + $0x28] sm:$0xff] %vm62_vm0, %v522_v58  ;;  %704 = vtanh.f32 %v249_v6 }
 0x137   :  { %v439_v62 = vpop.f32.mrf.mxu1 }
 0x138   :  { %v440_v63 = vadd.f32 %v1030_v56, %v439_v62 }
 0x13a   :  { %v523_v0 = vsub.f32 %v440_v63, %v798_v7  ;;  %639 = vmatmul.msk.f32.gmra.mxu2 %vm307_vm1, %v701_v60  ;;  %v252_v7 = vadd.f32 %v908_v25, %v251_v59  ;;  %v705_v31 = vpop.eup %704  ;;  %v257_v35 = vpop.f32.mrf.mxu3 }
 0x13b   :  { %v258_v40 = vadd.f32 %v908_v25, %v257_v35 }
 0x13c   :  { %555 = vst.msk [vmem:[%s1260_s5 + $0x30] sm:$0xff] %vm62_vm0, %v523_v0  ;;  %706 = vtanh.f32 %v252_v7 }
 0x13f   :  { %v442_v17 = vpop.f32.mrf.mxu1 }
 0x140   :  { %v443_v19 = vadd.f32 %v1030_v56, %v442_v17 }
 0x142   :  { %v524_v30 = vsub.f32 %v443_v19, %v805_v8  ;;  %640 = vmatmul.msk.f32.gmra.mxu2 %vm307_vm1, %v703_v16  ;;  %v255_v8 = vadd.f32 %v908_v25, %v254_v28  ;;  %v707_v36 = vpop.eup %706 }
 0x144   :  { %556 = vst.msk [vmem:[%s1260_s5 + $0x38] sm:$0xff] %vm62_vm0, %v524_v30  ;;  %708 = vtanh.f32 %v255_v8 }
 0x145   :  { %710 = vtanh.f32 %v258_v40 }
 0x147   :  { %v445_v1 = vpop.f32.mrf.mxu1 }
 0x148   :  { %v446_v32 = vadd.f32 %v1030_v56, %v445_v1 }
 0x14a   :  { %v525_v34 = vsub.f32 %v446_v32, %v812_v9  ;;  %641 = vmatmul.msk.f32.gmra.mxu2 %vm307_vm1, %v705_v31  ;;  %v260_v9 = vpop.f32.mrf.mxu3  ;;  %v709_v42 = vpop.eup %708 }
 0x14b   :  { %v711_v47 = vpop.eup %710 }
 0x14c   :  { %557 = vst.msk [vmem:[%s1260_s5 + $0x40] sm:$0xff] %vm62_vm0, %v525_v34 }
 0x14f   :  { %v448_v38 = vpop.f32.mrf.mxu1 }
 0x150   :  { %v449_v2 = vadd.f32 %v1030_v56, %v448_v38 }
 0x152   :  { %v526_v39 = vsub.f32 %v449_v2, %v819_v10  ;;  %642 = vmatmul.msk.f32.gmra.mxu2 %vm307_vm1, %v707_v36  ;;  %v261_v10 = vadd.f32 %v908_v25, %v260_v9  ;;  %v263_v46 = vpop.f32.mrf.mxu3 }
 0x154   :  { %558 = vst.msk [vmem:[%s1260_s5 + $0x48] sm:$0xff] %vm62_vm0, %v526_v39  ;;  %712 = vtanh.f32 %v261_v10 }
 0x157   :  { %v451_v43 = vpop.f32.mrf.mxu1 }
 0x158   :  { %v452_v44 = vadd.f32 %v1030_v56, %v451_v43 }
 0x15a   :  { %v527_v3 = vsub.f32 %v452_v44, %v826_v11  ;;  %643 = vmatmul.msk.f32.gmra.mxu2 %vm307_vm1, %v709_v42  ;;  %v264_v11 = vadd.f32 %v908_v25, %v263_v46  ;;  %v713_v51 = vpop.eup %712  ;;  %v266_v55 = vpop.f32.mrf.mxu3 }
 0x15c   :  { %559 = vst.msk [vmem:[%s1260_s5 + $0x50] sm:$0xff] %vm62_vm0, %v527_v3  ;;  %714 = vtanh.f32 %v264_v11 }
 0x15f   :  { %v454_v48 = vpop.f32.mrf.mxu1 }
 0x160   :  { %v455_v50 = vadd.f32 %v1030_v56, %v454_v48 }
 0x162   :  { %v528_v4 = vsub.f32 %v455_v50, %v833_v12  ;;  %644 = vmatmul.msk.f32.gmra.mxu2 %vm307_vm1, %v711_v47  ;;  %v267_v12 = vadd.f32 %v908_v25, %v266_v55  ;;  %v715_v5 = vpop.eup %714  ;;  %v269_v63 = vpop.f32.mrf.mxu3 }
 0x164   :  { %560 = vst.msk [vmem:[%s1260_s5 + $0x58] sm:$0xff] %vm62_vm0, %v528_v4  ;;  %716 = vtanh.f32 %v267_v12 }
 0x167   :  { %v457_v52 = vpop.f32.mrf.mxu1 }
 0x168   :  { %v458_v54 = vadd.f32 %v1030_v56, %v457_v52 }
 0x16a   :  { %v529_v58 = vsub.f32 %v458_v54, %v840_v13  ;;  %645 = vmatmul.msk.f32.gmra.mxu2 %vm307_vm1, %v713_v51  ;;  %v270_v13 = vadd.f32 %v908_v25, %v269_v63  ;;  %v717_v0 = vpop.eup %716 }
 0x16c   :  { %561 = vst.msk [vmem:[%s1260_s5 + $0x60] sm:$0xff] %vm62_vm0, %v529_v58  ;;  %718 = vtanh.f32 %v270_v13 }
 0x16f   :  { %v460_v59 = vpop.f32.mrf.mxu1 }
 0x170   :  { %v461_v60 = vadd.f32 %v1030_v56, %v460_v59 }
 0x172   :  { %v530_v62 = vsub.f32 %v461_v60, %v863_v18  ;;  %646 = vmatmul.msk.f32.gmra.mxu2 %vm307_vm1, %v715_v5  ;;  %v719_v18 = vpop.eup %718 }
 0x174   :  { %562 = vst.msk [vmem:[%s1260_s5 + $0x68] sm:$0xff] %vm62_vm0, %v530_v62 }
 0x177   :  { %v463_v6 = vpop.f32.mrf.mxu1 }
 0x178   :  { %v464_v16 = vadd.f32 %v1030_v56, %v463_v6 }
 0x17a   :  { %v531_v17 = vsub.f32 %v464_v16, %v880_v21  ;;  %647 = vmatmul.msk.f32.gmra.mxu2 %vm307_vm1, %v717_v0 }
 0x17c   :  { %563 = vst.msk [vmem:[%s1260_s5 + $0x70] sm:$0xff] %vm62_vm0, %v531_v17 }
 0x17f   :  { %v466_v19 = vpop.f32.mrf.mxu1 }
 0x180   :  { %v467_v28 = vadd.f32 %v1030_v56, %v466_v19 }
 0x182   :  { %v532_v25 = vsub.f32 %v467_v28, %v894_v23  ;;  %648 = vmatmul.msk.f32.gmra.mxu2 %vm307_vm1, %v719_v18 }
 0x184   :  { %564 = vst.msk [vmem:[%s1260_s5 + $0x78] sm:$0xff] %vm62_vm0, %v532_v25 }
 0x18d   :  { %v469_v21 = vpop.f32.mrf.mxu2 }
 0x18e   :  { %v470_v30 = vadd.f32 %v1030_v56, %v469_v21 }
 0x190   :  { %v533_v7 = vsub.f32 %v470_v30, %v913_v27 }
 0x192   :  { %565 = vst.msk [vmem:[%s1260_s5 + $0x80] sm:$0xff] %vm62_vm0, %v533_v7 }
 0x195   :  { %v472_v31 = vpop.f32.mrf.mxu2 }
 0x196   :  { %v473_v23 = vadd.f32 %v1030_v56, %v472_v31 }
 0x198   :  { %v534_v1 = vsub.f32 %v473_v23, %v850_v15 }
 0x19a   :  { %566 = vst.msk [vmem:[%s1260_s5 + $0x88] sm:$0xff] %vm62_vm0, %v534_v1 }
 0x19d   :  { %v475_v32 = vpop.f32.mrf.mxu2 }
 0x19e   :  { %v476_v34 = vadd.f32 %v1030_v56, %v475_v32 }
 0x1a0   :  { %v535_v27 = vsub.f32 %v476_v34, %v873_v20 }
 0x1a2   :  { %567 = vst.msk [vmem:[%s1260_s5 + $0x90] sm:$0xff] %vm62_vm0, %v535_v27 }
 0x1a5   :  { %v478_v35 = vpop.f32.mrf.mxu2 }
 0x1a6   :  { %v479_v8 = vadd.f32 %v1030_v56, %v478_v35 }
 0x1a8   :  { %v536_v15 = vsub.f32 %v479_v8, %v887_v22 }
 0x1aa   :  { %568 = vst.msk [vmem:[%s1260_s5 + $0x98] sm:$0xff] %vm62_vm0, %v536_v15 }
 0x1ad   :  { %v481_v36 = vpop.f32.mrf.mxu2 }
 0x1ae   :  { %v482_v38 = vadd.f32 %v1030_v56, %v481_v36 }
 0x1b0   :  { %v537_v20 = vsub.f32 %v482_v38, %v901_v24 }
 0x1b2   :  { %569 = vst.msk [vmem:[%s1260_s5 + $0xa0] sm:$0xff] %vm62_vm0, %v537_v20 }
 0x1b5   :  { %v484_v2 = vpop.f32.mrf.mxu2 }
 0x1b6   :  { %v485_v39 = vadd.f32 %v1030_v56, %v484_v2 }
 0x1b8   :  { %v538_v22 = vsub.f32 %v485_v39, %v921_v29 }
 0x1ba   :  { %570 = vst.msk [vmem:[%s1260_s5 + $0xa8] sm:$0xff] %vm62_vm0, %v538_v22 }
 0x1bd   :  { %v487_v9 = vpop.f32.mrf.mxu2 }
 0x1be   :  { %v488_v40 = vadd.f32 %v1030_v56, %v487_v9 }
 0x1c0   :  { %v539_v24 = vsub.f32 %v488_v40, %v930_v33 }
 0x1c2   :  { %571 = vst.msk [vmem:[%s1260_s5 + $0xb0] sm:$0xff] %vm62_vm0, %v539_v24 }
 0x1c5   :  { %v490_v42 = vpop.f32.mrf.mxu2 }
 0x1c6   :  { %v491_v43 = vadd.f32 %v1030_v56, %v490_v42 }
 0x1c8   :  { %v540_v29 = vsub.f32 %v491_v43, %v939_v37 }
 0x1ca   :  { %572 = vst.msk [vmem:[%s1260_s5 + $0xb8] sm:$0xff] %vm62_vm0, %v540_v29 }
 0x1cd   :  { %v493_v44 = vpop.f32.mrf.mxu2 }
 0x1ce   :  { %v494_v3 = vadd.f32 %v1030_v56, %v493_v44 }
 0x1d0   :  { %v541_v33 = vsub.f32 %v494_v3, %v948_v41 }
 0x1d2   :  { %573 = vst.msk [vmem:[%s1260_s5 + $0xc0] sm:$0xff] %vm62_vm0, %v541_v33 }
 0x1d5   :  { %v496_v10 = vpop.f32.mrf.mxu2 }
 0x1d6   :  { %v497_v46 = vadd.f32 %v1030_v56, %v496_v10 }
 0x1d8   :  { %v542_v37 = vsub.f32 %v497_v46, %v957_v45 }
 0x1da   :  { %574 = vst.msk [vmem:[%s1260_s5 + $0xc8] sm:$0xff] %vm62_vm0, %v542_v37 }
 0x1dd   :  { %v499_v47 = vpop.f32.mrf.mxu2 }
 0x1de   :  { %v500_v48 = vadd.f32 %v1030_v56, %v499_v47 }
 0x1e0   :  { %v543_v41 = vsub.f32 %v500_v48, %v966_v49 }
 0x1e2   :  { %575 = vst.msk [vmem:[%s1260_s5 + $0xd0] sm:$0xff] %vm62_vm0, %v543_v41 }
 0x1e5   :  { %v502_v50 = vpop.f32.mrf.mxu2 }
 0x1e6   :  { %v503_v4 = vadd.f32 %v1030_v56, %v502_v50 }
 0x1e8   :  { %v544_v45 = vsub.f32 %v503_v4, %v975_v53 }
 0x1ea   :  { %576 = vst.msk [vmem:[%s1260_s5 + $0xd8] sm:$0xff] %vm62_vm0, %v544_v45 }
 0x1ed   :  { %v505_v11 = vpop.f32.mrf.mxu2 }
 0x1ee   :  { %v506_v51 = vadd.f32 %v1030_v56, %v505_v11 }
 0x1f0   :  { %v545_v49 = vsub.f32 %v506_v51, %v984_v57 }
 0x1f2   :  { %577 = vst.msk [vmem:[%s1260_s5 + $0xe0] sm:$0xff] %vm62_vm0, %v545_v49 }
 0x1f5   :  { %v508_v52 = vpop.f32.mrf.mxu2 }
 0x1f6   :  { %v509_v54 = vadd.f32 %v1030_v56, %v508_v52 }
 0x1f8   :  { %v546_v53 = vsub.f32 %v509_v54, %v993_v61 }
 0x1fa   :  { %578 = vst.msk [vmem:[%s1260_s5 + $0xe8] sm:$0xff] %vm62_vm0, %v546_v53 }
 0x1fd   :  { %v511_v55 = vpop.f32.mrf.mxu2 }
 0x1fe   :  { %v512_v58 = vadd.f32 %v1030_v56, %v511_v55 }
 0x200   :  { %v547_v57 = vsub.f32 %v512_v58, %v1002_v14 }
 0x202   :  { %579 = vst.msk [vmem:[%s1260_s5 + $0xf0] sm:$0xff] %vm62_vm0, %v547_v57 }
 0x205   :  { %v514_v12 = vpop.f32.mrf.mxu2 }
 0x206   :  { %v515_v5 = vadd.f32 %v1030_v56, %v514_v12 }
 0x208   :  { %v548_v61 = vsub.f32 %v515_v5, %v1011_v26 }
 0x20a   :  { %580 = vst.msk [vmem:[%s1260_s5 + $0xf8] sm:$0xff] %vm62_vm0, %v548_v61 }

</bundles_post_ra>
